<compile_context>
chip_gen: v7x
topology: tpu7x:2x2x1
jax: 0.10.0
libtpu: 0.0.40
codegen_flags: <defaults>
</compile_context>

<pallas_src>
import functools

import jax
import jax.numpy as jnp
from jax.experimental import pallas as pl
from jax.experimental.pallas import tpu as pltpu


def _fusion_kernel(w1_ref, w2_ref, b_ref, xt_ref, xd_ref, o_ref):
    # w1_ref / w2_ref: (C, C) resident weight halves; b_ref: (C, 1) fp32 bias.
    # xt_ref / xd_ref / o_ref: (C, TILE_HW) per-image pixel tiles (lane axis = pixels).
    acc = jnp.dot(w1_ref[...], xt_ref[...], preferred_element_type=jnp.float32)
    acc = acc + jnp.dot(w2_ref[...], xd_ref[...], preferred_element_type=jnp.float32)
    acc = acc + b_ref[...]                       # (C, 1) broadcast over lanes
    o_ref[...] = acc.astype(o_ref.dtype)


def _round_up(x, m):
    return ((x + m - 1) // m) * m


def _vmem_capacity_bytes():
    """Generation-aware VMEM capacity (v5e/v6e 128 MiB, v7x 64 MiB/TC)."""
    try:
        cap = getattr(pltpu.get_tpu_info(), "vmem_capacity_bytes", None)
        if cap:
            return int(cap)
    except Exception:
        pass
    return 64 * 1024 * 1024                      # conservative fallback (v7x per-TC)


def _pick_tile_hw(hw, c, n, io_dtype):
    """Largest lane-dense HW tile that honestly fits the pipeline in VMEM."""
    io_itemsize = jnp.dtype(io_dtype).itemsize
    sub_io = max(8, 32 // io_itemsize)           # sublane multiple of the I/O dtype
    c_io = _round_up(c, sub_io)                  # sublane-padded C for I/O tiles
    c_f32 = _round_up(c, 8)                      # fp32 accumulator padding

    vmem_cap = _vmem_capacity_bytes()
    pipeline_budget = vmem_cap // 3              # ~1/3 of capacity for streamed tiles

    # Resident parameter blocks (two (C,C) weights + (C,1) bias). Counted as if
    # double-buffered so the no-Buffered(1) fallback also stays in budget.
    param_itemsize = io_itemsize if jnp.issubdtype(jnp.dtype(io_dtype), jnp.floating) else 4
    param_bytes = 2 * (2 * c_io * c_io * param_itemsize + c_f32 * 128 * 4)
    pipeline_budget = max(pipeline_budget - param_bytes, 512 * 1024)

    # Per-pixel-column bytes: 2 input + 1 output tile, double-buffered, plus one
    # fp32 accumulator column.
    bytes_per_col = 2 * 3 * c_io * io_itemsize + c_f32 * 4
    max_cols = max(128, pipeline_budget // bytes_per_col)
    max_cols = min(max_cols, 2048)               # memory-bound: >2K lanes buys nothing

    if hw <= max_cols:
        tile = hw                                # full-extent block: always legal
    else:
        tile = (max_cols // 128) * 128
        for cand in range(tile, 127, -128):      # prefer a divisor of HW (unmasked tail)
            if hw % cand == 0:
                tile = cand
                break
        tile = max(128, tile)

    # Guarantee >= 2 grid points so both v7x TensorCores get work at batch 1.
    if n == 1 and tile == hw and hw >= 256:
        if hw % 256 == 0:
            tile = hw // 2
        else:
            cand = _round_up(-(-hw // 2), 128)
            if cand < hw:
                tile = cand
    return tile


@functools.lru_cache(maxsize=None)
def _build_fusion_call(n, c, hw, tile_hw, io_dtype_name, param_dtype_name,
                       single_buffer_params):
    io_dtype = jnp.dtype(io_dtype_name)
    io_itemsize = io_dtype.itemsize
    grid = (n, pl.cdiv(hw, tile_hw))

    # Grid-invariant blocks: never re-fetched, so a single buffer suffices.
    resident = dict(pipeline_mode=pl.Buffered(1)) if single_buffer_params else {}

    vmem_cap = _vmem_capacity_bytes()
    cost = pl.CostEstimate(
        flops=4 * n * hw * c * c,
        transcendentals=0,
        bytes_accessed=3 * n * c * hw * io_itemsize
        + 2 * c * c * jnp.dtype(param_dtype_name).itemsize + c * 4,
    )

    return pl.pallas_call(
        _fusion_kernel,
        out_shape=jax.ShapeDtypeStruct((n, c, hw), io_dtype),
        grid=grid,
        in_specs=[
            pl.BlockSpec((c, c), lambda i, j: (0, 0), **resident),       # W1 (resident)
            pl.BlockSpec((c, c), lambda i, j: (0, 0), **resident),       # W2 (resident)
            pl.BlockSpec((c, 1), lambda i, j: (0, 0), **resident),       # bias (resident)
            pl.BlockSpec((None, c, tile_hw), lambda i, j: (i, 0, j)),    # xt tile
            pl.BlockSpec((None, c, tile_hw), lambda i, j: (i, 0, j)),    # xd tile
        ],
        out_specs=pl.BlockSpec((None, c, tile_hw), lambda i, j: (i, 0, j)),
        compiler_params=pltpu.CompilerParams(
            dimension_semantics=("parallel", "parallel"),
            vmem_limit_bytes=int(vmem_cap * 0.6),
        ),
        cost_estimate=cost,
    )


def conv_feature_fusion(feat_trans, feat_difb, weight, bias):
    """feat_trans, feat_difb: (N, C, H, W).  weight: (C, 2C, 1, 1).  bias: (C,)."""
    N, C, H, W = feat_trans.shape
    io_dtype = feat_trans.dtype
    HW = H * W

    # Zero-copy views: NCHW -> (N, C, H*W).  No transposes anywhere.
    xt = feat_trans.reshape(N, C, HW)
    xd = feat_difb.reshape(N, C, HW)

    # Pre-split the conv weight into its two C-channel halves in the wrapper
    # (removes the per-iteration in-kernel slice).  Cast weights to the
    # activation dtype; accumulation stays fp32 via preferred_element_type.
    param_dtype = io_dtype if jnp.issubdtype(jnp.dtype(io_dtype), jnp.floating) else jnp.float32
    w = weight.reshape(C, 2 * C).astype(param_dtype)
    w1 = w[:, :C]
    w2 = w[:, C:]
    b = bias.reshape(C, 1).astype(jnp.float32)

    tile_hw = _pick_tile_hw(HW, C, N, io_dtype)

    def _run(single_buffer_params):
        call = _build_fusion_call(N, C, HW, tile_hw,
                                  jnp.dtype(io_dtype).name,
                                  jnp.dtype(param_dtype).name,
                                  single_buffer_params)
        return call(w1, w2, b, xt, xd)

    try:
        out = jax.block_until_ready(_run(True))
    except Exception:
        # Fallback: default double-buffered params (slightly more VMEM, same result).
        out = _run(False)
    return out.reshape(N, C, H, W)


def _reference(feat_trans, feat_difb, weight, bias):
    """Pure-JAX reference matching the PyTorch forward (NCHW 1x1 conv on concat)."""
    fused = jnp.concatenate([feat_trans, feat_difb], axis=1)            # (N, 2C, H, W)
    w = weight.reshape(weight.shape[0], weight.shape[1])                # (C, 2C)
    out = jnp.einsum("ncij,oc->noij", fused.astype(jnp.float32), w.astype(jnp.float32))
    out = out + bias[None, :, None, None]
    return out.astype(feat_trans.dtype)


if __name__ == "__main__":
    # Case 1: module-sized example (batch=2, ch=4, 16x16 spatial).
    key = jax.random.PRNGKey(0)
    k1, k2, k3, k4 = jax.random.split(key, 4)
    N, C, H, Wd = 2, 4, 16, 16
    feat_trans = jax.random.normal(k1, (N, C, H, Wd), dtype=jnp.float32)
    feat_difb = jax.random.normal(k2, (N, C, H, Wd), dtype=jnp.float32)
    weight = jax.random.normal(k3, (C, 2 * C, 1, 1), dtype=jnp.float32) * 0.1
    bias = jax.random.normal(k4, (C,), dtype=jnp.float32) * 0.1

    out = conv_feature_fusion(feat_trans, feat_difb, weight, bias)
    out = jax.block_until_ready(out)
    ref = _reference(feat_trans, feat_difb, weight, bias)
    assert out.shape == (N, C, H, Wd), out.shape
    assert jnp.allclose(out, ref, atol=1e-5, rtol=1e-5), float(jnp.max(jnp.abs(out - ref)))

    # Case 2: batch=1 with a non-128-multiple HW -> exercises the batch-1 HW
    # split (both TensorCores busy) and the masked ragged tail tile.
    k5, k6, k7, k8 = jax.random.split(jax.random.PRNGKey(1), 4)
    N2, C2, H2, W2 = 1, 8, 20, 20
    ft2 = jax.random.normal(k5, (N2, C2, H2, W2), dtype=jnp.float32)
    fd2 = jax.random.normal(k6, (N2, C2, H2, W2), dtype=jnp.float32)
    wt2 = jax.random.normal(k7, (C2, 2 * C2, 1, 1), dtype=jnp.float32) * 0.1
    bs2 = jax.random.normal(k8, (C2,), dtype=jnp.float32) * 0.1
    out2 = jax.block_until_ready(conv_feature_fusion(ft2, fd2, wt2, bs2))
    ref2 = _reference(ft2, fd2, wt2, bs2)
    assert out2.shape == (N2, C2, H2, W2), out2.shape
    assert jnp.allclose(out2, ref2, atol=1e-5, rtol=1e-5), float(jnp.max(jnp.abs(out2 - ref2)))

    print("KERNEL_OK")
</pallas_src>

<mosaic_0001>
module attributes {stable_mosaic.version = 11 : i64} {
  func.func @_fusion_kernel(%arg0: i32, %arg1: i32, %arg2: memref<4x4xf32, #tpu.memory_space<vmem>>, %arg3: memref<4x4xf32, #tpu.memory_space<vmem>>, %arg4: memref<4x1xf32, #tpu.memory_space<vmem>>, %arg5: memref<1x4x256xf32, #tpu.memory_space<vmem>>, %arg6: memref<1x4x256xf32, #tpu.memory_space<vmem>>, %arg7: memref<1x4x256xf32, #tpu.memory_space<vmem>>) attributes {dimension_semantics = [#tpu.dimension_semantics<parallel>, #tpu.dimension_semantics<parallel>], iteration_bounds = array<i64: 2, 1>, scalar_prefetch = 0 : i64, scratch_operands = 0 : i64, tpu.core_type = #tpu.core_type<tc>, window_params = [{pipeline_mode = #tpu.pipeline_mode<synchronous>, transform_indices = @transform_0, window_bounds = array<i64: 4, 4>}, {pipeline_mode = #tpu.pipeline_mode<synchronous>, transform_indices = @transform_1, window_bounds = array<i64: 4, 4>}, {pipeline_mode = #tpu.pipeline_mode<synchronous>, transform_indices = @transform_2, window_bounds = array<i64: 4, 1>}, {transform_indices = @transform_3, window_bounds = array<i64: 1, 4, 256>}, {transform_indices = @transform_4, window_bounds = array<i64: 1, 4, 256>}, {transform_indices = @transform_5, window_bounds = array<i64: 1, 4, 256>}]} {
    %c0 = arith.constant 0 : index
    %c0_0 = arith.constant 0 : index
    %0 = vector.load %arg2[%c0, %c0_0] : memref<4x4xf32, #tpu.memory_space<vmem>>, vector<4x4xf32>
    %c0_1 = arith.constant 0 : index
    %c0_2 = arith.constant 0 : index
    %c0_3 = arith.constant 0 : index
    %1 = vector.load %arg5[%c0_1, %c0_2, %c0_3] : memref<1x4x256xf32, #tpu.memory_space<vmem>>, vector<1x4x256xf32>
    %2 = vector.shape_cast %1 : vector<1x4x256xf32> to vector<4x256xf32>
    %cst = arith.constant dense<0.000000e+00> : vector<4x256xf32>
    %3 = tpu.matmul %0, %2, %cst {dimension_numbers = #tpu.dot_dimension_numbers<[1], [0], [0], [1], [0, 0, 1, 1], [], []>} : vector<4x4xf32>, vector<4x256xf32>, vector<4x256xf32> -> vector<4x256xf32>
    %c0_4 = arith.constant 0 : index
    %c0_5 = arith.constant 0 : index
    %4 = vector.load %arg3[%c0_4, %c0_5] : memref<4x4xf32, #tpu.memory_space<vmem>>, vector<4x4xf32>
    %c0_6 = arith.constant 0 : index
    %c0_7 = arith.constant 0 : index
    %c0_8 = arith.constant 0 : index
    %5 = vector.load %arg6[%c0_6, %c0_7, %c0_8] : memref<1x4x256xf32, #tpu.memory_space<vmem>>, vector<1x4x256xf32>
    %6 = vector.shape_cast %5 : vector<1x4x256xf32> to vector<4x256xf32>
    %cst_9 = arith.constant dense<0.000000e+00> : vector<4x256xf32>
    %7 = tpu.matmul %4, %6, %cst_9 {dimension_numbers = #tpu.dot_dimension_numbers<[1], [0], [0], [1], [0, 0, 1, 1], [], []>} : vector<4x4xf32>, vector<4x256xf32>, vector<4x256xf32> -> vector<4x256xf32>
    %8 = arith.addf %3, %7 : vector<4x256xf32>
    %c0_10 = arith.constant 0 : index
    %c0_11 = arith.constant 0 : index
    %9 = vector.load %arg4[%c0_10, %c0_11] : memref<4x1xf32, #tpu.memory_space<vmem>>, vector<4x1xf32>
    %10 = vector.broadcast %9 : vector<4x1xf32> to vector<4x256xf32>
    %11 = arith.addf %8, %10 : vector<4x256xf32>
    %c0_12 = arith.constant 0 : index
    %c0_13 = arith.constant 0 : index
    %c0_14 = arith.constant 0 : index
    %12 = vector.load %arg7[%c0_12, %c0_13, %c0_14] : memref<1x4x256xf32, #tpu.memory_space<vmem>>, vector<1x4x256xf32>
    %13 = vector.shape_cast %12 : vector<1x4x256xf32> to vector<4x256xf32>
    %14 = vector.shape_cast %11 : vector<4x256xf32> to vector<1x4x256xf32>
    tpu.vector_store %arg7[%c0_12, %c0_13, %c0_14], %14 {strides = array<i32>} : memref<1x4x256xf32, #tpu.memory_space<vmem>>, vector<1x4x256xf32>,
    return
  }
  func.func @transform_0(%arg0: i32, %arg1: i32) -> (i32, i32) {
    %c0_i32 = arith.constant 0 : i32
    %c0_i32_0 = arith.constant 0 : i32
    %c0_i32_1 = arith.constant 0 : i32
    return %c0_i32, %c0_i32_0 : i32, i32
  }
  func.func @transform_1(%arg0: i32, %arg1: i32) -> (i32, i32) {
    %c0_i32 = arith.constant 0 : i32
    %c0_i32_0 = arith.constant 0 : i32
    %c0_i32_1 = arith.constant 0 : i32
    return %c0_i32, %c0_i32_0 : i32, i32
  }
  func.func @transform_2(%arg0: i32, %arg1: i32) -> (i32, i32) {
    %c0_i32 = arith.constant 0 : i32
    %c0_i32_0 = arith.constant 0 : i32
    %c0_i32_1 = arith.constant 0 : i32
    return %c0_i32, %c0_i32_0 : i32, i32
  }
  func.func @transform_3(%arg0: i32, %arg1: i32) -> (i32, i32, i32) {
    %c0_i32 = arith.constant 0 : i32
    %c0_i32_0 = arith.constant 0 : i32
    return %arg0, %c0_i32, %arg1 : i32, i32, i32
  }
  func.func @transform_4(%arg0: i32, %arg1: i32) -> (i32, i32, i32) {
    %c0_i32 = arith.constant 0 : i32
    %c0_i32_0 = arith.constant 0 : i32
    return %arg0, %c0_i32, %arg1 : i32, i32, i32
  }
  func.func @transform_5(%arg0: i32, %arg1: i32) -> (i32, i32, i32) {
    %c0_i32 = arith.constant 0 : i32
    %c0_i32_0 = arith.constant 0 : i32
    return %arg0, %c0_i32, %arg1 : i32, i32, i32
  }
}

module attributes {stable_mosaic.version = 11 : i64} {
  func.func @_fusion_kernel(%arg0: i32, %arg1: i32, %arg2: memref<4x4xf32, #tpu.memory_space<vmem>>, %arg3: memref<4x4xf32, #tpu.memory_space<vmem>>, %arg4: memref<4x1xf32, #tpu.memory_space<vmem>>, %arg5: memref<1x4x256xf32, #tpu.memory_space<vmem>>, %arg6: memref<1x4x256xf32, #tpu.memory_space<vmem>>, %arg7: memref<1x4x256xf32, #tpu.memory_space<vmem>>) attributes {dimension_semantics = [#tpu.dimension_semantics<parallel>, #tpu.dimension_semantics<parallel>], iteration_bounds = array<i64: 2, 1>, scalar_prefetch = 0 : i64, scratch_operands = 0 : i64, tpu.core_type = #tpu.core_type<tc>, window_params = [{pipeline_mode = #tpu.pipeline_mode<synchronous>, transform_indices = @transform_0, window_bounds = array<i64: 4, 4>}, {pipeline_mode = #tpu.pipeline_mode<synchronous>, transform_indices = @transform_1, window_bounds = array<i64: 4, 4>}, {pipeline_mode = #tpu.pipeline_mode<synchronous>, transform_indices = @transform_2, window_bounds = array<i64: 4, 1>}, {transform_indices = @transform_3, window_bounds = array<i64: 1, 4, 256>}, {transform_indices = @transform_4, window_bounds = array<i64: 1, 4, 256>}, {transform_indices = @transform_5, window_bounds = array<i64: 1, 4, 256>}]} {
    %c0 = arith.constant 0 : index
    %c0_0 = arith.constant 0 : index
    %0 = vector.load %arg2[%c0, %c0_0] : memref<4x4xf32, #tpu.memory_space<vmem>>, vector<4x4xf32>
    %c0_1 = arith.constant 0 : index
    %c0_2 = arith.constant 0 : index
    %c0_3 = arith.constant 0 : index
    %1 = vector.load %arg5[%c0_1, %c0_2, %c0_3] : memref<1x4x256xf32, #tpu.memory_space<vmem>>, vector<1x4x256xf32>
    %2 = vector.shape_cast %1 : vector<1x4x256xf32> to vector<4x256xf32>
    %cst = arith.constant dense<0.000000e+00> : vector<4x256xf32>
    %3 = tpu.matmul %0, %2, %cst {dimension_numbers = #tpu.dot_dimension_numbers<[1], [0], [0], [1], [0, 0, 1, 1], [], []>} : vector<4x4xf32>, vector<4x256xf32>, vector<4x256xf32> -> vector<4x256xf32>
    %c0_4 = arith.constant 0 : index
    %c0_5 = arith.constant 0 : index
    %4 = vector.load %arg3[%c0_4, %c0_5] : memref<4x4xf32, #tpu.memory_space<vmem>>, vector<4x4xf32>
    %c0_6 = arith.constant 0 : index
    %c0_7 = arith.constant 0 : index
    %c0_8 = arith.constant 0 : index
    %5 = vector.load %arg6[%c0_6, %c0_7, %c0_8] : memref<1x4x256xf32, #tpu.memory_space<vmem>>, vector<1x4x256xf32>
    %6 = vector.shape_cast %5 : vector<1x4x256xf32> to vector<4x256xf32>
    %cst_9 = arith.constant dense<0.000000e+00> : vector<4x256xf32>
    %7 = tpu.matmul %4, %6, %cst_9 {dimension_numbers = #tpu.dot_dimension_numbers<[1], [0], [0], [1], [0, 0, 1, 1], [], []>} : vector<4x4xf32>, vector<4x256xf32>, vector<4x256xf32> -> vector<4x256xf32>
    %8 = arith.addf %3, %7 : vector<4x256xf32>
    %c0_10 = arith.constant 0 : index
    %c0_11 = arith.constant 0 : index
    %9 = vector.load %arg4[%c0_10, %c0_11] : memref<4x1xf32, #tpu.memory_space<vmem>>, vector<4x1xf32>
    %10 = vector.broadcast %9 : vector<4x1xf32> to vector<4x256xf32>
    %11 = arith.addf %8, %10 : vector<4x256xf32>
    %c0_12 = arith.constant 0 : index
    %c0_13 = arith.constant 0 : index
    %c0_14 = arith.constant 0 : index
    %12 = vector.load %arg7[%c0_12, %c0_13, %c0_14] : memref<1x4x256xf32, #tpu.memory_space<vmem>>, vector<1x4x256xf32>
    %13 = vector.shape_cast %12 : vector<1x4x256xf32> to vector<4x256xf32>
    %14 = vector.shape_cast %11 : vector<4x256xf32> to vector<1x4x256xf32>
    tpu.vector_store %arg7[%c0_12, %c0_13, %c0_14], %14 {strides = array<i32>} : memref<1x4x256xf32, #tpu.memory_space<vmem>>, vector<1x4x256xf32>,
    return
  }
  func.func @transform_0(%arg0: i32, %arg1: i32) -> (i32, i32) {
    %c0_i32 = arith.constant 0 : i32
    %c0_i32_0 = arith.constant 0 : i32
    %c0_i32_1 = arith.constant 0 : i32
    return %c0_i32, %c0_i32_0 : i32, i32
  }
  func.func @transform_1(%arg0: i32, %arg1: i32) -> (i32, i32) {
    %c0_i32 = arith.constant 0 : i32
    %c0_i32_0 = arith.constant 0 : i32
    %c0_i32_1 = arith.constant 0 : i32
    return %c0_i32, %c0_i32_0 : i32, i32
  }
  func.func @transform_2(%arg0: i32, %arg1: i32) -> (i32, i32) {
    %c0_i32 = arith.constant 0 : i32
    %c0_i32_0 = arith.constant 0 : i32
    %c0_i32_1 = arith.constant 0 : i32
    return %c0_i32, %c0_i32_0 : i32, i32
  }
  func.func @transform_3(%arg0: i32, %arg1: i32) -> (i32, i32, i32) {
    %c0_i32 = arith.constant 0 : i32
    %c0_i32_0 = arith.constant 0 : i32
    return %arg0, %c0_i32, %arg1 : i32, i32, i32
  }
  func.func @transform_4(%arg0: i32, %arg1: i32) -> (i32, i32, i32) {
    %c0_i32 = arith.constant 0 : i32
    %c0_i32_0 = arith.constant 0 : i32
    return %arg0, %c0_i32, %arg1 : i32, i32, i32
  }
  func.func @transform_5(%arg0: i32, %arg1: i32) -> (i32, i32, i32) {
    %c0_i32 = arith.constant 0 : i32
    %c0_i32_0 = arith.constant 0 : i32
    return %arg0, %c0_i32, %arg1 : i32, i32, i32
  }
}

</mosaic_0001>

<bundles_post_ra>
// kernel: tpu_custom_call.1
= control target key start
LH: loop header
LB: loop body
LE: loop exit
PB: predicated region body
PF: predicated region fallthrough
CT: control target
= control target key end

     0   :  { %s1225_s0 = inlined_call_operand.hbm [shape: f32[4,4], index: 0, kind: input, shape index: {}]   ;;  %s1226_s1 = inlined_call_operand.hbm [shape: f32[4,4], index: 1, kind: input, shape index: {}]   ;;  %s1227_s2 = inlined_call_operand.vmem [shape: f32[4,1], index: 2, kind: input, shape index: {}]   ;;  %s1228_s3 = inlined_call_operand.vmem [shape: f32[2,4,256], index: 3, kind: input, shape index: {}]   ;;  %s1229_s4 = inlined_call_operand.hbm [shape: f32[2,4,256], index: 4, kind: input, shape index: {}]   ;;  %s1230_s5 = inlined_call_operand.hbm [shape: f32[2,4,256], index: 5, kind: output, shape index: {}]  }
   0x1   :  { %1234 = sst [smem:[#allocation13_spill]] %s1225_s0 }
   0x2   :  { %10 = vsyncpa [#allocation3], 0 }
   0x3   :  { %11 = vsyncpa [#allocation6], 0 }
   0x4   :  { %12 = vsyncpa [#allocation4], 0 }
   0x5   :  { %14 = vsyncpa [#allocation4 + $0x1], 0  ;;  %s971_s18 = smov 0   ;;  %s973_s19 = smov 0  }
   0x6   :  { %s975_s20 = smov 0   ;;  %s977_s21 = smov 0  }
   0x7   :  { %s979_s22 = smov 0   ;;  %s981_s23 = smov 0  }
   0x8 LB: > { %s1002_s24 = sadd.s32 4294967295, %s933_s23   ;;  %s638_s25 = sadd.s32 4294967294, %s933_s23   ;;  %s933_s23 = sphi %s981_s23, %s20_s23   ;;  %s929_s22 = sphi %s979_s22, %s1255_s22   ;;  %s925_s21 = sphi %s977_s21, %s1254_s21   ;;  %s921_s20 = sphi %s975_s20, %s1253_s20   ;;  %s917_s19 = sphi %s973_s19, %s1252_s19   ;;  %s913_s18 = sphi %s971_s18, %s1251_s18  }
   0x9   : > { %p145_p0 = scmp.ne.s32.totalorder %s917_s19, %s913_s18  ;;  %p1231_p1 = scmp.eq.s32.totalorder %s1002_s24, 0 }
   0xa   : > { %p177_p3 = scmp.eq.s32.totalorder %s638_s25, 1  ;;  %p639_p5 = scmp.ge.s32.totalorder %s933_s23, 1 }
   0xb   : > { %p1011_p4 = por %p1231_p1, %p145_p0  ;;  %p184_p7 = scmp.lt.s32.totalorder %s933_s23, 3 }
   0xc   : > { %p1016_p6 = por %p177_p3, %p145_p0  ;;  %s935_s29 = smov [#allocation2]  }
   0xd   : > { %s1235_s26 = scalar_select %p1011_p4, 1, 0 }
   0xe   : > { %s1236_s27 = scalar_select %p1016_p6, 1, 0 }
   0xf   : > { %p1021_p8 = pnand %p639_p5, %p184_p7  ;;  %s197_s30 = sshll.u32 %s935_s29, 4  ;;  %s198_s30 = int_to_ptr.vmem [resolvable:$true] %s197_s30 }
  0x10   : > { %s936_s6 = smov [#allocation5]   ;;  %s1239_s0 = sld [smem:[#allocation13_spill]] }
  0x11   : > { %s1237_s28 = scalar_select %p1021_p8, 1, 0 }
  0x12   : > { %p681_p10 = pneg %p1021_p8  ;;  %s208_s7 = sshll.u32 %s936_s6, 4  ;;  %s1034_s7 = int_to_ptr.vmem [resolvable:$true] %s208_s7 }
  0x14   : > { %p1030_p11 = pnand %p681_p10, %p1231_p1 }
  0x16   : > { %s757_s11 = scalar_lea.hbm %s1239_s0, 64  ;;  %p759_p13 = pneg %p1030_p11 }
  0x17   : > { %p758_p12 = scmp.ne.s32.totalorder %s1239_s0, %s757_s11  ;;  %p764_p5 = scmp.lt.u32.totalorder %s757_s11, %s1239_s0 }
  0x19   : > { %p760_p0 = pnand %p759_p13, %p758_p12 }
  0x1b   : > { %p761_p3 = pneg %p760_p0 }
  0x1d   : > { %p766_p7 = pnand %p764_p5, %p761_p3 }
  0x1f   : > { %769 = shalt.err (!%p766_p7)
}
  0x20   : > { %s770_s16 = scalar_lea.vmem %s198_s30, 64  ;;  %p778_p2 = scmp.lt.s32.totalorder %s198_s30, %s198_s30 }
  0x21   : > { %p771_p10 = scmp.ne.s32.totalorder %s198_s30, %s770_s16  ;;  %p779_p6 = scmp.lt.s32.totalorder %s770_s16, %s770_s16 }
  0x23   : > { %p773_p9 = pnand %p771_p10, %p759_p13  ;;  %p780_p4 = por %p779_p6, %p778_p2 }
  0x25   : > { %p774_p1 = pneg %p773_p9 }
  0x27   : > { %p781_p8 = pnand %p780_p4, %p774_p1 }
  0x29   : > { %784 = shalt.err (!%p781_p8)
}
  0x2a   : > { %684 = dma.hbm_to_vmem [thread:$0]  (!%p1030_p11), %s1239_s0, 64, %s198_s30, [#allocation3]  }
  0x2b   : > { %s785_s9 = scalar_lea.hbm %s1226_s1, 64 }
  0x2c   : > { %p786_p9 = scmp.ne.s32.totalorder %s1226_s1, %s785_s9  ;;  %p792_p4 = scmp.lt.u32.totalorder %s785_s9, %s1226_s1 }
  0x2e   : > { %p788_p2 = pnand %p786_p9, %p759_p13 }
  0x30   : > { %p789_p1 = pneg %p788_p2 }
  0x32   : > { %p794_p6 = pnand %p792_p4, %p789_p1 }
  0x34   : > { %797 = shalt.err (!%p794_p6)
}
  0x35   : > { %s798_s30 = scalar_lea.vmem %s1034_s7, 64  ;;  %p806_p3 = scmp.lt.s32.totalorder %s1034_s7, %s1034_s7 }
  0x36   : > { %p799_p8 = scmp.ne.s32.totalorder %s1034_s7, %s798_s30  ;;  %p807_p5 = scmp.lt.s32.totalorder %s798_s30, %s798_s30 }
  0x38   : > { %p801_p12 = pnand %p799_p8, %p759_p13  ;;  %p808_p7 = por %p807_p5, %p806_p3 }
  0x3a   : > { %p802_p0 = pneg %p801_p12 }
  0x3c   : > { %p809_p10 = pnand %p808_p7, %p802_p0 }
  0x3e   : > { %812 = shalt.err (!%p809_p10)
}
  0x3f   : > { %687 = dma.hbm_to_vmem [thread:$0]  (!%p1030_p11), %s1226_s1, 64, %s1034_s7, [#allocation6]  }
  0x40   : > { %s32_s16 = sadd.s32 1, %s929_s22  ;;  %s132_s17 = sadd.s32 1, %s921_s20 }
  0x41   : > { %p34_p13 = scmp.ge.s32.totalorder %s32_s16, 2  ;;  %p139_p9 = scmp.ne.s32.totalorder %s921_s20, %s917_s19 }
  0x42   : > { %p140_p2 = scmp.eq.s32.totalorder %s933_s23, 0  ;;  %p698_p1 = scmp.lt.s32.totalorder %s933_s23, 2 }
  0x43   : > { %s1257_s16 = smov (%p34_p13, %s32_s16), 0  ;;  %p1240_p6 = scmp.eq.s32.totalorder %s1002_s24, 1 }
  0x44   : > { %p141_p4 = por %p140_p2, %p139_p9  ;;  %s127_s25 = ssub.s32 %s929_s22, %s1257_s16 }
  0x45   : > { %p1093_p8 = por %p1240_p6, %p139_p9  ;;  %s235_s29 = sand.u32 1, %s933_s23  }
  0x46   : > { %p130_p12 = scmp.eq.s32.totalorder %s127_s25, 0  ;;  %s237_s6 = sand.u32 1, %s921_s20  }
  0x47   : > { %s664_s7 = sshll.u32 %s929_s22, 7  ;;  %s643_s10 = sshll.u32 %s237_s6, 3 }
  0x48   : > { %s1103_s9 = scalar_select %p130_p12, %s921_s20, %s132_s17  }
  0x49   : > { %s1108_s13 = scalar_lea.hbm %s1229_s4, %s664_s7  ;;  %p1110_p11 = pnand %p698_p1, %p141_p4 }
  0x4a   : > { %s239_s14 = scalar_lea.vmem [#allocation7], %s643_s10  ;;  %s236_s17 = scalar_lea.sflag [#allocation3], %s235_s29 }
  0x4b   : > { %s249_s15 = sshll.u32 %s239_s14, 4  ;;  %s813_s25 = scalar_lea.hbm %s1108_s13, 128  ;;  %s1114_s15 = int_to_ptr.vmem [resolvable:$true] %s249_s15 }
  0x4c   : > { %p814_p0 = scmp.ne.s32.totalorder %s1108_s13, %s813_s25  ;;  %p815_p3 = pneg %p1110_p11 }
  0x4d   : > { %s818_s11 = scalar_lea.hbm %s1229_s4, 256  ;;  %p819_p10 = scmp.lt.u32.totalorder %s1108_s13, %s1229_s4 }
  0x4e   : > { %p816_p5 = pnand %p815_p3, %p814_p0  ;;  %p820_p13 = scmp.lt.u32.totalorder %s818_s11, %s813_s25 }
  0x4f   : > { %p822_p2 = scmp.lt.u32.totalorder %s813_s25, %s1108_s13 }
  0x50   : > { %p817_p7 = pneg %p816_p5  ;;  %p821_p9 = por %p820_p13, %p819_p10 }
  0x52   : > { %p823_p1 = por %p822_p2, %p821_p9 }
  0x54   : > { %p824_p4 = pnand %p823_p1, %p817_p7 }
  0x56   : > { %827 = shalt.err (!%p824_p4)
}
  0x57   : > { %s828_s29 = scalar_lea.vmem %s1114_s15, 128  ;;  %s937_s10 = smov [#allocation7]  }
  0x58   : > { %p829_p6 = scmp.ne.s32.totalorder %s1114_s15, %s828_s29  ;;  %s833_s14 = sshll.u32 %s937_s10, 4  ;;  %s834_s14 = int_to_ptr.vmem [resolvable:$false] %s833_s14 }
  0x59   : > { %s835_s0 = scalar_lea.vmem %s834_s14, 256  ;;  %p836_p5 = scmp.lt.s32.totalorder %s1114_s15, %s834_s14 }
  0x5a   : > { %p831_p12 = pnand %p829_p6, %p815_p3  ;;  %p837_p10 = scmp.lt.s32.totalorder %s835_s0, %s828_s29 }
  0x5c   : > { %p832_p0 = pneg %p831_p12  ;;  %p838_p13 = por %p837_p10, %p836_p5 }
  0x5e   : > { %p839_p9 = pnand %p838_p13, %p832_p0 }
  0x60   : > { %842 = shalt.err (!%p839_p9)
}
  0x61   : > { %691 = dma.hbm_to_vmem [thread:$0]  (!%p1110_p11), %s1108_s13, 128, %s1114_s15, %s236_s17  }
  0x62   : > { %p1243_p7 = scmp.ne.s32.totalorder %s1237_s28, 0 }
  0x63   : > { %p1244_p3 = scmp.eq.s32.totalorder (!%p1243_p7), %s1002_s24, 0 }
  0x64   : > { %258 = sbr.rel (%p1243_p7) target bundleno = 361 (0x169), region = 40 }
  0x6b   : > { %896 = dma.done.wait (%p1244_p3), [#allocation3], 64   ;;  %p1245_p2 = pmov %p1244_p3 }
  0x6d   : > { %898 = vsyncadd (%p1245_p2), [#allocation3], 4294967232  ;;  %p1246_p1 = pmov %p1245_p2 }
  0x6f   : > { %900 = dma.done.wait (%p1246_p1), [#allocation6], 64   ;;  %p1247_p4 = pmov %p1246_p1 }
  0x70   : > { %s268_s13 = sand.u32 1, %s1002_s24   ;;  %s270_s30 = sand.u32 1, %s917_s19  }
  0x71   : > { %902 = vsyncadd (%p1247_p4), [#allocation6], 4294967232  ;;  %s1155_s28 = sshll.u32 %s270_s30, 3  ;;  %s269_s15 = scalar_lea.sflag [#allocation3], %s268_s13 }
  0x72   : > { %s272_s17 = scalar_lea.vmem [#allocation7], %s1155_s28  ;;  %p1248_p11 = scmp.ne.s32.totalorder %s1235_s26, 0 }
  0x74   : > { %904 = dma.done.wait (%p1248_p11), %s269_s15, 128  }
  0x75   : > { %906 = vsyncadd (%p1248_p11), %s269_s15, 4294967168  ;;  %p309_p6 = scmp.lt.s32.totalorder %s925_s21, 1  ;;  %v938_v0 = vmov 0.0   ;;  %v939_v1 = vmov 0   ;;  %v323_v2 = vld [vmem:[%s272_s17] sm:$0xff]  ;;  %vm330_vm0 = vcmask 1043456  }
  0x76   : > { %399 = vmatprep.mubr.f32.mxu1 %v938_v0  ;;  %479 = vmatprep.mubr.f32.mxu0 %v938_v0  ;;  %v325_v4 = vcombine.high %v323_v2, %v323_v2  ;;  %v486_v6 = vld [vmem:[%s1227_s2] sm:$0xf]  ;;  %v322_v7 = vld [vmem:[#allocation5] sm:$0xf]  ;;  %vm326_vm1 = vcmask 31744   ;;  %s666_s29 = sshll.u32 %s925_s21, 7 }
  0x77   : > { %s310_s25 = scalar_select %p309_p6, %s925_s21, 1  ;;  %754 = vset.pattern.permute.xlu0 %v939_v1  ;;  %v320_v8 = vld [vmem:[#allocation2] sm:$0xf] }
  0x78   : > { %489 = vperm.xlu0 %754, %v486_v6   ;;  %653 = vmatprep.subr.msk.mxu1 %vm330_vm0, %v325_v4  ;;  %s307_s10 = scalar_lea.vmem [#allocation8], %s1155_s28  ;;  %s1175_s15 = scalar_lea.hbm %s1230_s5, %s666_s29 }
  0x79   : > { %s665_s24 = sshll.u32 %s310_s25, 3  ;;  %654 = vmatpush1.msk.msra.mxu1 %vm330_vm0, %v323_v2  ;;  %s516_s14 = sshll.u32 %s307_s10, 4  ;;  %s1177_s14 = int_to_ptr.vmem [resolvable:$true] %s516_s14 }
  0x7a   : > { %s316_s11 = scalar_lea.vmem %s1228_s3, %s665_s24  ;;  %655 = vmatmul.mubr.msk.f32.vlgmr.msra.gmra.mrb[0].mxu1 %vm326_vm1, %v322_v7  ;;  %s500_s17 = scalar_lea.sflag [#allocation4], %s270_s30 }
  0x7b   : > { %v321_v3 = vld [vmem:[%s316_s11] sm:$0xff]  ;;  %s843_s25 = scalar_lea.vmem %s1177_s14, 128  ;;  %s940_s21 = smov [#allocation8]  }
  0x7c   : > { %v407_v5 = vcombine.high %v321_v3, %v321_v3  ;;  %p844_p12 = scmp.ne.s32.totalorder %s1177_s14, %s843_s25  ;;  %s847_s28 = sshll.u32 %s940_s21, 4  ;;  %s848_s28 = int_to_ptr.vmem [resolvable:$false] %s847_s28 }
  0x7d   : > { %s849_s24 = scalar_lea.vmem %s848_s28, 256  ;;  %p850_p10 = scmp.lt.s32.totalorder %s1177_s14, %s848_s28 }
  0x7e   : > { %656 = vmatprep.subr.msk.mxu0 %vm330_vm0, %v407_v5  ;;  %p845_p0 = pnand %p844_p12, %p1093_p8  ;;  %p851_p13 = scmp.lt.s32.totalorder %s849_s24, %s843_s25 }
  0x7f   : > { %657 = vmatpush1.msk.msra.mxu0 %vm330_vm0, %v321_v3 }
  0x80   : > { %658 = vmatmul.mubr.msk.f32.vlgmr.msra.gmra.mrb[0].mxu0 %vm326_vm1, %v320_v8  ;;  %p846_p5 = pneg %p845_p0  ;;  %p852_p9 = por %p851_p13, %p850_p10 }
  0x82   : > { %p853_p7 = pnand %p852_p9, %p846_p5 }
  0xf7   : > { %v490_v9 = vpop.permute.xlu0 %489 }
 0x14d   : > { %v401_v10 = vpop.f32.mrb[0].mxu1 }
 0x14e   : > { %v403_v13 = vpop.f32.mrb[1].mxu1 }
 0x153   : > { %v481_v11 = vpop.f32.mrb[0].mxu0 }
 0x154   : > { %v482_v12 = vadd.f32 %v481_v11, %v401_v10  ;;  %v483_v14 = vpop.f32.mrb[1].mxu0 }
 0x155   : > { %v484_v15 = vadd.f32 %v483_v14, %v403_v13 }
 0x156   : > { %v492_v16 = vadd.f32 %v490_v9, %v482_v12 }
 0x157   : > { %v493_v17 = vadd.f32 %v490_v9, %v484_v15 }
 0x159   : > { %v496_v18 = vcombine.low %v492_v16, %v493_v17 }
 0x15b   : > { %498 = vst [vmem:[%s307_s10] sm:$0xff] %v496_v18 }
 0x15c   : > { %856 = shalt.err (!%p853_p7)
}
 0x15d   : > { %s857_s30 = scalar_lea.hbm %s1175_s15, 128  ;;  %s861_s11 = scalar_lea.hbm %s1230_s5, 256 }
 0x15e   : > { %p858_p3 = scmp.ne.s32.totalorder %s1175_s15, %s857_s30  ;;  %p862_p4 = scmp.lt.u32.totalorder %s1175_s15, %s1230_s5 }
 0x15f   : > { %p863_p11 = scmp.lt.u32.totalorder %s861_s11, %s857_s30  ;;  %p865_p12 = scmp.lt.u32.totalorder %s857_s30, %s1175_s15 }
 0x160   : > { %p859_p2 = pnand %p858_p3, %p1093_p8 }
 0x161   : > { %p864_p6 = por %p863_p11, %p862_p4 }
 0x162   : > { %p860_p1 = pneg %p859_p2 }
 0x163   : > { %p866_p0 = por %p865_p12, %p864_p6 }
 0x165   : > { %p867_p5 = pnand %p866_p0, %p860_p1 }
 0x167   : > { %870 = shalt.err (!%p867_p5)
}
 0x168   : > { %679 = dma.vmem_to_hbm [thread:$0]  (%p1093_p8), %s1177_s14, 128, %s1175_s15, %s500_s17  }
 0x169 PF: > { %s528_s29 = sand.u32 1, %s913_s18   ;;  %p1249_p10 = scmp.ne.s32.totalorder %s1236_s27, 0 }
 0x16a   : > { %p1250_p13 = scmp.ge.s32.totalorder %s933_s23, 2  ;;  %s529_s10 = scalar_lea.sflag [#allocation4], %s528_s29 }
 0x16c   : > { %p693_p9 = pnand %p1250_p13, %p1249_p10 }
 0x16e   : > { %908 = dma.done.wait (!%p693_p9), %s529_s10, 128  }
 0x16f   : > { %910 = vsyncadd (!%p693_p9), %s529_s10, 4294967168  ;;  %s20_s23 = sadd.s32 1, %s933_s23   ;;  %s1251_s18 = smov %s917_s19 }
 0x170   : > { %p17_p7 = scmp.ge.s32.totalorder %s20_s23, 4   ;;  %s1252_s19 = smov %s921_s20 }
 0x171   : > { %s1253_s20 = smov %s1103_s9  ;;  %s1254_s21 = smov %s929_s22 }
 0x172   : > { %s1255_s22 = smov %s1257_s16  ;;  %19 = sbr.rel (!%p17_p7) target bundleno = 8 (0x8), region = 95 }
 0x179   :  { %534 = vsyncpa [#allocation3], 1 }
 0x17a   :  { %536 = vsyncpa [#allocation3 + $0x1], 1 }
 0x17b   :  { %537 = vsyncpa [#allocation6], 1 }
 0x17c   :  { %538 = vsyncpa [#allocation4], 1 }
 0x17d   :  { %540 = vsyncpa [#allocation4 + $0x1], 1 }

// kernel: tpu_custom_call.1
= control target key start
LH: loop header
LB: loop body
LE: loop exit
PB: predicated region body
PF: predicated region fallthrough
CT: control target
= control target key end

     0   :  { %s1225_s0 = inlined_call_operand.hbm [shape: f32[4,4], index: 0, kind: input, shape index: {}]   ;;  %s1226_s1 = inlined_call_operand.hbm [shape: f32[4,4], index: 1, kind: input, shape index: {}]   ;;  %s1227_s2 = inlined_call_operand.vmem [shape: f32[4,1], index: 2, kind: input, shape index: {}]   ;;  %s1228_s3 = inlined_call_operand.vmem [shape: f32[2,4,256], index: 3, kind: input, shape index: {}]   ;;  %s1229_s4 = inlined_call_operand.hbm [shape: f32[2,4,256], index: 4, kind: input, shape index: {}]   ;;  %s1230_s5 = inlined_call_operand.hbm [shape: f32[2,4,256], index: 5, kind: output, shape index: {}]  }
   0x1   :  { %1234 = sst [smem:[#allocation13_spill]] %s1225_s0 }
   0x2   :  { %10 = vsyncpa [#allocation3], 0 }
   0x3   :  { %11 = vsyncpa [#allocation6], 0 }
   0x4   :  { %12 = vsyncpa [#allocation4], 0 }
   0x5   :  { %14 = vsyncpa [#allocation4 + $0x1], 0  ;;  %s971_s18 = smov 0   ;;  %s973_s19 = smov 0  }
   0x6   :  { %s975_s20 = smov 0   ;;  %s977_s21 = smov 0  }
   0x7   :  { %s979_s22 = smov 0   ;;  %s981_s23 = smov 0  }
   0x8 LB: > { %s1002_s24 = sadd.s32 4294967295, %s933_s23   ;;  %s638_s25 = sadd.s32 4294967294, %s933_s23   ;;  %s933_s23 = sphi %s981_s23, %s20_s23   ;;  %s929_s22 = sphi %s979_s22, %s1255_s22   ;;  %s925_s21 = sphi %s977_s21, %s1254_s21   ;;  %s921_s20 = sphi %s975_s20, %s1253_s20   ;;  %s917_s19 = sphi %s973_s19, %s1252_s19   ;;  %s913_s18 = sphi %s971_s18, %s1251_s18  }
   0x9   : > { %p145_p0 = scmp.ne.s32.totalorder %s917_s19, %s913_s18  ;;  %p1231_p1 = scmp.eq.s32.totalorder %s1002_s24, 0 }
   0xa   : > { %p177_p3 = scmp.eq.s32.totalorder %s638_s25, 1  ;;  %p639_p5 = scmp.ge.s32.totalorder %s933_s23, 1 }
   0xb   : > { %p1011_p4 = por %p1231_p1, %p145_p0  ;;  %p184_p7 = scmp.lt.s32.totalorder %s933_s23, 3 }
   0xc   : > { %p1016_p6 = por %p177_p3, %p145_p0  ;;  %s935_s29 = smov [#allocation2]  }
   0xd   : > { %s1235_s26 = scalar_select %p1011_p4, 1, 0 }
   0xe   : > { %s1236_s27 = scalar_select %p1016_p6, 1, 0 }
   0xf   : > { %p1021_p8 = pnand %p639_p5, %p184_p7  ;;  %s197_s30 = sshll.u32 %s935_s29, 4  ;;  %s198_s30 = int_to_ptr.vmem [resolvable:$true] %s197_s30 }
  0x10   : > { %s936_s6 = smov [#allocation5]   ;;  %s1239_s0 = sld [smem:[#allocation13_spill]] }
  0x11   : > { %s1237_s28 = scalar_select %p1021_p8, 1, 0 }
  0x12   : > { %p681_p10 = pneg %p1021_p8  ;;  %s208_s7 = sshll.u32 %s936_s6, 4  ;;  %s1034_s7 = int_to_ptr.vmem [resolvable:$true] %s208_s7 }
  0x14   : > { %p1030_p11 = pnand %p681_p10, %p1231_p1 }
  0x16   : > { %s757_s11 = scalar_lea.hbm %s1239_s0, 64  ;;  %p759_p13 = pneg %p1030_p11 }
  0x17   : > { %p758_p12 = scmp.ne.s32.totalorder %s1239_s0, %s757_s11  ;;  %p764_p5 = scmp.lt.u32.totalorder %s757_s11, %s1239_s0 }
  0x19   : > { %p760_p0 = pnand %p759_p13, %p758_p12 }
  0x1b   : > { %p761_p3 = pneg %p760_p0 }
  0x1d   : > { %p766_p7 = pnand %p764_p5, %p761_p3 }
  0x1f   : > { %769 = shalt.err (!%p766_p7)
}
  0x20   : > { %s770_s16 = scalar_lea.vmem %s198_s30, 64  ;;  %p778_p2 = scmp.lt.s32.totalorder %s198_s30, %s198_s30 }
  0x21   : > { %p771_p10 = scmp.ne.s32.totalorder %s198_s30, %s770_s16  ;;  %p779_p6 = scmp.lt.s32.totalorder %s770_s16, %s770_s16 }
  0x23   : > { %p773_p9 = pnand %p771_p10, %p759_p13  ;;  %p780_p4 = por %p779_p6, %p778_p2 }
  0x25   : > { %p774_p1 = pneg %p773_p9 }
  0x27   : > { %p781_p8 = pnand %p780_p4, %p774_p1 }
  0x29   : > { %784 = shalt.err (!%p781_p8)
}
  0x2a   : > { %684 = dma.hbm_to_vmem [thread:$0]  (!%p1030_p11), %s1239_s0, 64, %s198_s30, [#allocation3]  }
  0x2b   : > { %s785_s9 = scalar_lea.hbm %s1226_s1, 64 }
  0x2c   : > { %p786_p9 = scmp.ne.s32.totalorder %s1226_s1, %s785_s9  ;;  %p792_p4 = scmp.lt.u32.totalorder %s785_s9, %s1226_s1 }
  0x2e   : > { %p788_p2 = pnand %p786_p9, %p759_p13 }
  0x30   : > { %p789_p1 = pneg %p788_p2 }
  0x32   : > { %p794_p6 = pnand %p792_p4, %p789_p1 }
  0x34   : > { %797 = shalt.err (!%p794_p6)
}
  0x35   : > { %s798_s30 = scalar_lea.vmem %s1034_s7, 64  ;;  %p806_p3 = scmp.lt.s32.totalorder %s1034_s7, %s1034_s7 }
  0x36   : > { %p799_p8 = scmp.ne.s32.totalorder %s1034_s7, %s798_s30  ;;  %p807_p5 = scmp.lt.s32.totalorder %s798_s30, %s798_s30 }
  0x38   : > { %p801_p12 = pnand %p799_p8, %p759_p13  ;;  %p808_p7 = por %p807_p5, %p806_p3 }
  0x3a   : > { %p802_p0 = pneg %p801_p12 }
  0x3c   : > { %p809_p10 = pnand %p808_p7, %p802_p0 }
  0x3e   : > { %812 = shalt.err (!%p809_p10)
}
  0x3f   : > { %687 = dma.hbm_to_vmem [thread:$0]  (!%p1030_p11), %s1226_s1, 64, %s1034_s7, [#allocation6]  }
  0x40   : > { %s32_s16 = sadd.s32 1, %s929_s22  ;;  %s132_s17 = sadd.s32 1, %s921_s20 }
  0x41   : > { %p34_p13 = scmp.ge.s32.totalorder %s32_s16, 2  ;;  %p139_p9 = scmp.ne.s32.totalorder %s921_s20, %s917_s19 }
  0x42   : > { %p140_p2 = scmp.eq.s32.totalorder %s933_s23, 0  ;;  %p698_p1 = scmp.lt.s32.totalorder %s933_s23, 2 }
  0x43   : > { %s1257_s16 = smov (%p34_p13, %s32_s16), 0  ;;  %p1240_p6 = scmp.eq.s32.totalorder %s1002_s24, 1 }
  0x44   : > { %p141_p4 = por %p140_p2, %p139_p9  ;;  %s127_s25 = ssub.s32 %s929_s22, %s1257_s16 }
  0x45   : > { %p1093_p8 = por %p1240_p6, %p139_p9  ;;  %s235_s29 = sand.u32 1, %s933_s23  }
  0x46   : > { %p130_p12 = scmp.eq.s32.totalorder %s127_s25, 0  ;;  %s237_s6 = sand.u32 1, %s921_s20  }
  0x47   : > { %s664_s7 = sshll.u32 %s929_s22, 7  ;;  %s643_s10 = sshll.u32 %s237_s6, 3 }
  0x48   : > { %s1103_s9 = scalar_select %p130_p12, %s921_s20, %s132_s17  }
  0x49   : > { %s1108_s13 = scalar_lea.hbm %s1229_s4, %s664_s7  ;;  %p1110_p11 = pnand %p698_p1, %p141_p4 }
  0x4a   : > { %s239_s14 = scalar_lea.vmem [#allocation7], %s643_s10  ;;  %s236_s17 = scalar_lea.sflag [#allocation3], %s235_s29 }
  0x4b   : > { %s249_s15 = sshll.u32 %s239_s14, 4  ;;  %s813_s25 = scalar_lea.hbm %s1108_s13, 128  ;;  %s1114_s15 = int_to_ptr.vmem [resolvable:$true] %s249_s15 }
  0x4c   : > { %p814_p0 = scmp.ne.s32.totalorder %s1108_s13, %s813_s25  ;;  %p815_p3 = pneg %p1110_p11 }
  0x4d   : > { %s818_s11 = scalar_lea.hbm %s1229_s4, 256  ;;  %p819_p10 = scmp.lt.u32.totalorder %s1108_s13, %s1229_s4 }
  0x4e   : > { %p816_p5 = pnand %p815_p3, %p814_p0  ;;  %p820_p13 = scmp.lt.u32.totalorder %s818_s11, %s813_s25 }
  0x4f   : > { %p822_p2 = scmp.lt.u32.totalorder %s813_s25, %s1108_s13 }
  0x50   : > { %p817_p7 = pneg %p816_p5  ;;  %p821_p9 = por %p820_p13, %p819_p10 }
  0x52   : > { %p823_p1 = por %p822_p2, %p821_p9 }
  0x54   : > { %p824_p4 = pnand %p823_p1, %p817_p7 }
  0x56   : > { %827 = shalt.err (!%p824_p4)
}
  0x57   : > { %s828_s29 = scalar_lea.vmem %s1114_s15, 128  ;;  %s937_s10 = smov [#allocation7]  }
  0x58   : > { %p829_p6 = scmp.ne.s32.totalorder %s1114_s15, %s828_s29  ;;  %s833_s14 = sshll.u32 %s937_s10, 4  ;;  %s834_s14 = int_to_ptr.vmem [resolvable:$false] %s833_s14 }
  0x59   : > { %s835_s0 = scalar_lea.vmem %s834_s14, 256  ;;  %p836_p5 = scmp.lt.s32.totalorder %s1114_s15, %s834_s14 }
  0x5a   : > { %p831_p12 = pnand %p829_p6, %p815_p3  ;;  %p837_p10 = scmp.lt.s32.totalorder %s835_s0, %s828_s29 }
  0x5c   : > { %p832_p0 = pneg %p831_p12  ;;  %p838_p13 = por %p837_p10, %p836_p5 }
  0x5e   : > { %p839_p9 = pnand %p838_p13, %p832_p0 }
  0x60   : > { %842 = shalt.err (!%p839_p9)
}
  0x61   : > { %691 = dma.hbm_to_vmem [thread:$0]  (!%p1110_p11), %s1108_s13, 128, %s1114_s15, %s236_s17  }
  0x62   : > { %p1243_p7 = scmp.ne.s32.totalorder %s1237_s28, 0 }
  0x63   : > { %p1244_p3 = scmp.eq.s32.totalorder (!%p1243_p7), %s1002_s24, 0 }
  0x64   : > { %258 = sbr.rel (%p1243_p7) target bundleno = 361 (0x169), region = 40 }
  0x6b   : > { %896 = dma.done.wait (%p1244_p3), [#allocation3], 64   ;;  %p1245_p2 = pmov %p1244_p3 }
  0x6d   : > { %898 = vsyncadd (%p1245_p2), [#allocation3], 4294967232  ;;  %p1246_p1 = pmov %p1245_p2 }
  0x6f   : > { %900 = dma.done.wait (%p1246_p1), [#allocation6], 64   ;;  %p1247_p4 = pmov %p1246_p1 }
  0x70   : > { %s268_s13 = sand.u32 1, %s1002_s24   ;;  %s270_s30 = sand.u32 1, %s917_s19  }
  0x71   : > { %902 = vsyncadd (%p1247_p4), [#allocation6], 4294967232  ;;  %s1155_s28 = sshll.u32 %s270_s30, 3  ;;  %s269_s15 = scalar_lea.sflag [#allocation3], %s268_s13 }
  0x72   : > { %s272_s17 = scalar_lea.vmem [#allocation7], %s1155_s28  ;;  %p1248_p11 = scmp.ne.s32.totalorder %s1235_s26, 0 }
  0x74   : > { %904 = dma.done.wait (%p1248_p11), %s269_s15, 128  }
  0x75   : > { %906 = vsyncadd (%p1248_p11), %s269_s15, 4294967168  ;;  %p309_p6 = scmp.lt.s32.totalorder %s925_s21, 1  ;;  %v938_v0 = vmov 0.0   ;;  %v939_v1 = vmov 0   ;;  %v323_v2 = vld [vmem:[%s272_s17] sm:$0xff]  ;;  %vm330_vm0 = vcmask 1043456  }
  0x76   : > { %399 = vmatprep.mubr.f32.mxu1 %v938_v0  ;;  %479 = vmatprep.mubr.f32.mxu0 %v938_v0  ;;  %v325_v4 = vcombine.high %v323_v2, %v323_v2  ;;  %v486_v6 = vld [vmem:[%s1227_s2] sm:$0xf]  ;;  %v322_v7 = vld [vmem:[#allocation5] sm:$0xf]  ;;  %vm326_vm1 = vcmask 31744   ;;  %s666_s29 = sshll.u32 %s925_s21, 7 }
  0x77   : > { %s310_s25 = scalar_select %p309_p6, %s925_s21, 1  ;;  %754 = vset.pattern.permute.xlu0 %v939_v1  ;;  %v320_v8 = vld [vmem:[#allocation2] sm:$0xf] }
  0x78   : > { %489 = vperm.xlu0 %754, %v486_v6   ;;  %653 = vmatprep.subr.msk.mxu1 %vm330_vm0, %v325_v4  ;;  %s307_s10 = scalar_lea.vmem [#allocation8], %s1155_s28  ;;  %s1175_s15 = scalar_lea.hbm %s1230_s5, %s666_s29 }
  0x79   : > { %s665_s24 = sshll.u32 %s310_s25, 3  ;;  %654 = vmatpush1.msk.msra.mxu1 %vm330_vm0, %v323_v2  ;;  %s516_s14 = sshll.u32 %s307_s10, 4  ;;  %s1177_s14 = int_to_ptr.vmem [resolvable:$true] %s516_s14 }
  0x7a   : > { %s316_s11 = scalar_lea.vmem %s1228_s3, %s665_s24  ;;  %655 = vmatmul.mubr.msk.f32.vlgmr.msra.gmra.mrb[0].mxu1 %vm326_vm1, %v322_v7  ;;  %s500_s17 = scalar_lea.sflag [#allocation4], %s270_s30 }
  0x7b   : > { %v321_v3 = vld [vmem:[%s316_s11] sm:$0xff]  ;;  %s843_s25 = scalar_lea.vmem %s1177_s14, 128  ;;  %s940_s21 = smov [#allocation8]  }
  0x7c   : > { %v407_v5 = vcombine.high %v321_v3, %v321_v3  ;;  %p844_p12 = scmp.ne.s32.totalorder %s1177_s14, %s843_s25  ;;  %s847_s28 = sshll.u32 %s940_s21, 4  ;;  %s848_s28 = int_to_ptr.vmem [resolvable:$false] %s847_s28 }
  0x7d   : > { %s849_s24 = scalar_lea.vmem %s848_s28, 256  ;;  %p850_p10 = scmp.lt.s32.totalorder %s1177_s14, %s848_s28 }
  0x7e   : > { %656 = vmatprep.subr.msk.mxu0 %vm330_vm0, %v407_v5  ;;  %p845_p0 = pnand %p844_p12, %p1093_p8  ;;  %p851_p13 = scmp.lt.s32.totalorder %s849_s24, %s843_s25 }
  0x7f   : > { %657 = vmatpush1.msk.msra.mxu0 %vm330_vm0, %v321_v3 }
  0x80   : > { %658 = vmatmul.mubr.msk.f32.vlgmr.msra.gmra.mrb[0].mxu0 %vm326_vm1, %v320_v8  ;;  %p846_p5 = pneg %p845_p0  ;;  %p852_p9 = por %p851_p13, %p850_p10 }
  0x82   : > { %p853_p7 = pnand %p852_p9, %p846_p5 }
  0xf7   : > { %v490_v9 = vpop.permute.xlu0 %489 }
 0x14d   : > { %v401_v10 = vpop.f32.mrb[0].mxu1 }
 0x14e   : > { %v403_v13 = vpop.f32.mrb[1].mxu1 }
 0x153   : > { %v481_v11 = vpop.f32.mrb[0].mxu0 }
 0x154   : > { %v482_v12 = vadd.f32 %v481_v11, %v401_v10  ;;  %v483_v14 = vpop.f32.mrb[1].mxu0 }
 0x155   : > { %v484_v15 = vadd.f32 %v483_v14, %v403_v13 }
 0x156   : > { %v492_v16 = vadd.f32 %v490_v9, %v482_v12 }
 0x157   : > { %v493_v17 = vadd.f32 %v490_v9, %v484_v15 }
 0x159   : > { %v496_v18 = vcombine.low %v492_v16, %v493_v17 }
 0x15b   : > { %498 = vst [vmem:[%s307_s10] sm:$0xff] %v496_v18 }
 0x15c   : > { %856 = shalt.err (!%p853_p7)
}
 0x15d   : > { %s857_s30 = scalar_lea.hbm %s1175_s15, 128  ;;  %s861_s11 = scalar_lea.hbm %s1230_s5, 256 }
 0x15e   : > { %p858_p3 = scmp.ne.s32.totalorder %s1175_s15, %s857_s30  ;;  %p862_p4 = scmp.lt.u32.totalorder %s1175_s15, %s1230_s5 }
 0x15f   : > { %p863_p11 = scmp.lt.u32.totalorder %s861_s11, %s857_s30  ;;  %p865_p12 = scmp.lt.u32.totalorder %s857_s30, %s1175_s15 }
 0x160   : > { %p859_p2 = pnand %p858_p3, %p1093_p8 }
 0x161   : > { %p864_p6 = por %p863_p11, %p862_p4 }
 0x162   : > { %p860_p1 = pneg %p859_p2 }
 0x163   : > { %p866_p0 = por %p865_p12, %p864_p6 }
 0x165   : > { %p867_p5 = pnand %p866_p0, %p860_p1 }
 0x167   : > { %870 = shalt.err (!%p867_p5)
}
 0x168   : > { %679 = dma.vmem_to_hbm [thread:$0]  (%p1093_p8), %s1177_s14, 128, %s1175_s15, %s500_s17  }
 0x169 PF: > { %s528_s29 = sand.u32 1, %s913_s18   ;;  %p1249_p10 = scmp.ne.s32.totalorder %s1236_s27, 0 }
 0x16a   : > { %p1250_p13 = scmp.ge.s32.totalorder %s933_s23, 2  ;;  %s529_s10 = scalar_lea.sflag [#allocation4], %s528_s29 }
 0x16c   : > { %p693_p9 = pnand %p1250_p13, %p1249_p10 }
 0x16e   : > { %908 = dma.done.wait (!%p693_p9), %s529_s10, 128  }
 0x16f   : > { %910 = vsyncadd (!%p693_p9), %s529_s10, 4294967168  ;;  %s20_s23 = sadd.s32 1, %s933_s23   ;;  %s1251_s18 = smov %s917_s19 }
 0x170   : > { %p17_p7 = scmp.ge.s32.totalorder %s20_s23, 4   ;;  %s1252_s19 = smov %s921_s20 }
 0x171   : > { %s1253_s20 = smov %s1103_s9  ;;  %s1254_s21 = smov %s929_s22 }
 0x172   : > { %s1255_s22 = smov %s1257_s16  ;;  %19 = sbr.rel (!%p17_p7) target bundleno = 8 (0x8), region = 95 }
 0x179   :  { %534 = vsyncpa [#allocation3], 1 }
 0x17a   :  { %536 = vsyncpa [#allocation3 + $0x1], 1 }
 0x17b   :  { %537 = vsyncpa [#allocation6], 1 }
 0x17c   :  { %538 = vsyncpa [#allocation4], 1 }
 0x17d   :  { %540 = vsyncpa [#allocation4 + $0x1], 1 }

</bundles_post_ra>
